<compile_context>
chip_gen: v6e
topology: v6e:2x2x1
jax: 0.10.0
libtpu: 0.0.40
codegen_flags: <defaults>
</compile_context>

<pallas_src>
import jax
import jax.numpy as jnp
from jax.experimental import pallas as pl
from jax.experimental.pallas import tpu as pltpu

D_IN, H1, H2, H3, H4, D_OUT = 13, 100, 200, 150, 50, 1
_DIMS = [(D_IN, H1), (H1, H2), (H2, H3), (H3, H4), (H4, D_OUT)]

LANE = 128       # vreg lane width
ROW_ALIGN = 16   # bf16 packed sublane tile


def _round_up(v, m):
    return (v + m - 1) // m * m


def _cdiv(a, b):
    return -(-a // b)


# Padded (in, out) dims for each layer's weight.  Layer 1 keeps its natural
# K = 13 (matches the unpadded input); hidden dims round up to 128 lanes; the
# final output dim stays 1 (narrow output).  Zero padding is numerically exact
# under ReLU.
_PADDED_DIMS = [
    (D_IN, _round_up(H1, LANE)),                   # (13, 128)
    (_round_up(H1, LANE), _round_up(H2, LANE)),    # (128, 256)
    (_round_up(H2, LANE), _round_up(H3, LANE)),    # (256, 256)
    (_round_up(H3, LANE), _round_up(H4, LANE)),    # (256, 128)
    (_round_up(H4, LANE), D_OUT),                  # (128, 1)
]


def _mlp_kernel(x_ref,
                w1_ref, b1_ref,
                w2_ref, b2_ref,
                w3_ref, b3_ref,
                w4_ref, b4_ref,
                w5_ref, b5_ref,
                o_ref):
    """Whole hot path fused: 4 ReLU matmuls + final linear.

    Matmuls: bf16 operands, f32 accumulation (MXU).  Epilogues (bias, ReLU) f32.
    """
    def layer(h, w_ref, b_ref, relu):
        acc = jnp.dot(h, w_ref[...], preferred_element_type=jnp.float32) + b_ref[...]
        if relu:
            acc = jnp.maximum(acc, 0.0)
        return acc

    h = x_ref[...]                                             # (tm, 13)  bf16
    h = layer(h, w1_ref, b1_ref, True).astype(jnp.bfloat16)    # (tm, 128)
    h = layer(h, w2_ref, b2_ref, True).astype(jnp.bfloat16)    # (tm, 256)
    h = layer(h, w3_ref, b3_ref, True).astype(jnp.bfloat16)    # (tm, 256)
    h = layer(h, w4_ref, b4_ref, True).astype(jnp.bfloat16)    # (tm, 128)
    out = layer(h, w5_ref, b5_ref, False)                      # (tm, 1)  f32
    o_ref[...] = out.astype(o_ref.dtype)


def _pad2d(a, rows, cols, dtype):
    a = a.astype(jnp.float32)
    a = jnp.pad(a, ((0, rows - a.shape[0]), (0, cols - a.shape[1])))
    return a.astype(dtype)


def prepare_params(params):
    """Pad + cast parameters once at model-setup time (hoisted out of forward).

    Weights -> bf16 (MXU operands), biases -> f32 (VPU epilogue).
    Returns the flat list [w1, b1, ..., w5, b5] consumed by boston_forward.
    """
    flat = []
    for (w, b), (pin, pout) in zip(params, _PADDED_DIMS):
        flat.append(_pad2d(w, pin, pout, jnp.bfloat16))
        flat.append(_pad2d(b.reshape(1, -1), 1, pout, jnp.float32))
    return flat


def _choose_tile(n, tile_m):
    if n <= 256:
        return _round_up(n, ROW_ALIGN)
    # Balanced tile; guarantee >= 2 grid steps so both v7x TensorCores engage.
    steps = max(2, _cdiv(n, tile_m))
    return _round_up(_cdiv(n, steps), ROW_ALIGN)


def boston_forward(x, flat_params, *, tile_m=1024):
    """x: (N, 13) float array.  flat_params: output of prepare_params.  Returns (N, 1) f32."""
    n = x.shape[0]
    tm = _choose_tile(n, tile_m)
    n_pad = _round_up(n, tm)
    grid_m = n_pad // tm

    # bf16 MXU operand; keep the natural 13-column width (no lane padding).
    x_in = x.astype(jnp.bfloat16)
    if n_pad != n:
        x_in = jnp.pad(x_in, ((0, n_pad - n), (0, 0)))

    x_spec = pl.BlockSpec((tm, D_IN), lambda i: (i, 0))
    o_spec = pl.BlockSpec((tm, D_OUT), lambda i: (i, 0))
    # Whole (small, padded) weight/bias arrays with constant index maps:
    # revisited blocks, no per-step re-DMA.
    param_specs = [pl.BlockSpec(p.shape, lambda i: (0, 0)) for p in flat_params]

    out = pl.pallas_call(
        _mlp_kernel,
        out_shape=jax.ShapeDtypeStruct((n_pad, D_OUT), jnp.float32),
        grid_spec=pl.GridSpec(
            grid=(grid_m,),
            in_specs=[x_spec] + param_specs,
            out_specs=o_spec,
        ),
        compiler_params=pltpu.CompilerParams(
            dimension_semantics=("parallel",),
            vmem_limit_bytes=32 * 1024 * 1024),
    )(x_in, *flat_params)

    # Drop batch padding rows; output is already the natural (N, 1) width.
    return out[:n]


def init_params(key):
    """Deterministic init mimicking PyTorch Linear default (U[-1/sqrt(in), 1/sqrt(in)])."""
    params = []
    for fan_in, fan_out in _DIMS:
        key, kw, kb = jax.random.split(key, 3)
        bound = 1.0 / jnp.sqrt(jnp.float32(fan_in))
        w = jax.random.uniform(kw, (fan_in, fan_out), jnp.float32, -bound, bound)
        b = jax.random.uniform(kb, (1, fan_out), jnp.float32, -bound, bound)
        params.append((w, b))
    return params


def reference_f32(x, params):
    h = x
    for i, (w, b) in enumerate(params):
        h = h @ w + b
        if i < len(params) - 1:
            h = jnp.maximum(h, 0.0)
    return h


def reference_mixed(x, params):
    """Mirror of the kernel's precision policy: bf16 operands, f32 accum/bias/ReLU."""
    h = x.astype(jnp.bfloat16)
    for i, (w, b) in enumerate(params):
        h = jnp.dot(h, w.astype(jnp.bfloat16),
                    preferred_element_type=jnp.float32) + b
        if i < len(params) - 1:
            h = jnp.maximum(h, 0.0).astype(jnp.bfloat16)
    return h


if __name__ == "__main__":
    key = jax.random.PRNGKey(0)
    key, kx_small, kx_odd = jax.random.split(key, 3)
    params = init_params(key)
    flat_params = prepare_params(params)   # pad + cast once, reused across calls

    # Small batch (typical usage) + a non-multiple batch exercising row padding
    # and the >= 2 grid-step (dual-TensorCore) path.
    for n, kx in ((8, kx_small), (300, kx_odd)):
        x = jax.random.normal(kx, (n, D_IN), jnp.float32)
        out = jax.block_until_ready(boston_forward(x, flat_params))
        assert out.shape == (n, D_OUT)
        # Tight check vs a reference using the identical mixed precision.
        ref_m = reference_mixed(x, params)
        assert jnp.allclose(out, ref_m, atol=1e-2, rtol=1e-2), f"mismatch vs mixed ref (n={n})"
        # Loose sanity check vs the full-f32 reference (bf16 rounding tolerance).
        ref_f = reference_f32(x, params)
        assert jnp.allclose(out, ref_f, atol=1e-1, rtol=1e-1), f"mismatch vs f32 ref (n={n})"

    print("KERNEL_OK")
</pallas_src>

<mosaic_0001>
module attributes {stable_mosaic.version = 11 : i64} {
  func.func @_mlp_kernel(%arg0: i32, %arg1: memref<16x13xbf16, #tpu.memory_space<vmem>>, %arg2: memref<13x128xbf16, #tpu.memory_space<vmem>>, %arg3: memref<1x128xf32, #tpu.memory_space<vmem>>, %arg4: memref<128x256xbf16, #tpu.memory_space<vmem>>, %arg5: memref<1x256xf32, #tpu.memory_space<vmem>>, %arg6: memref<256x256xbf16, #tpu.memory_space<vmem>>, %arg7: memref<1x256xf32, #tpu.memory_space<vmem>>, %arg8: memref<256x128xbf16, #tpu.memory_space<vmem>>, %arg9: memref<1x128xf32, #tpu.memory_space<vmem>>, %arg10: memref<128x1xbf16, #tpu.memory_space<vmem>>, %arg11: memref<1x1xf32, #tpu.memory_space<vmem>>, %arg12: memref<16x1xf32, #tpu.memory_space<vmem>>) attributes {dimension_semantics = [#tpu.dimension_semantics<parallel>], iteration_bounds = array<i64: 1>, scalar_prefetch = 0 : i64, scratch_operands = 0 : i64, tpu.core_type = #tpu.core_type<tc>, window_params = [{transform_indices = @transform_0, window_bounds = array<i64: 16, 13>}, {pipeline_mode = #tpu.pipeline_mode<synchronous>, transform_indices = @transform_1, window_bounds = array<i64: 13, 128>}, {pipeline_mode = #tpu.pipeline_mode<synchronous>, transform_indices = @transform_2, window_bounds = array<i64: 1, 128>}, {pipeline_mode = #tpu.pipeline_mode<synchronous>, transform_indices = @transform_3, window_bounds = array<i64: 128, 256>}, {pipeline_mode = #tpu.pipeline_mode<synchronous>, transform_indices = @transform_4, window_bounds = array<i64: 1, 256>}, {pipeline_mode = #tpu.pipeline_mode<synchronous>, transform_indices = @transform_5, window_bounds = array<i64: 256, 256>}, {pipeline_mode = #tpu.pipeline_mode<synchronous>, transform_indices = @transform_6, window_bounds = array<i64: 1, 256>}, {pipeline_mode = #tpu.pipeline_mode<synchronous>, transform_indices = @transform_7, window_bounds = array<i64: 256, 128>}, {pipeline_mode = #tpu.pipeline_mode<synchronous>, transform_indices = @transform_8, window_bounds = array<i64: 1, 128>}, {pipeline_mode = #tpu.pipeline_mode<synchronous>, transform_indices = @transform_9, window_bounds = array<i64: 128, 1>}, {pipeline_mode = #tpu.pipeline_mode<synchronous>, transform_indices = @transform_10, window_bounds = array<i64: 1, 1>}, {transform_indices = @transform_11, window_bounds = array<i64: 16, 1>}]} {
    %c0 = arith.constant 0 : index
    %c0_0 = arith.constant 0 : index
    %0 = vector.load %arg1[%c0, %c0_0] : memref<16x13xbf16, #tpu.memory_space<vmem>>, vector<16x13xbf16>
    %c0_1 = arith.constant 0 : index
    %c0_2 = arith.constant 0 : index
    %1 = vector.load %arg2[%c0_1, %c0_2] : memref<13x128xbf16, #tpu.memory_space<vmem>>, vector<13x128xbf16>
    %cst = arith.constant dense<0.000000e+00> : vector<16x128xf32>
    %2 = tpu.matmul %0, %1, %cst {dimension_numbers = #tpu.dot_dimension_numbers<[1], [0], [0], [1], [0, 0, 1, 1], [], []>} : vector<16x13xbf16>, vector<13x128xbf16>, vector<16x128xf32> -> vector<16x128xf32>
    %c0_3 = arith.constant 0 : index
    %c0_4 = arith.constant 0 : index
    %3 = vector.load %arg3[%c0_3, %c0_4] : memref<1x128xf32, #tpu.memory_space<vmem>>, vector<1x128xf32>
    %4 = vector.broadcast %3 : vector<1x128xf32> to vector<16x128xf32>
    %5 = arith.addf %2, %4 : vector<16x128xf32>
    %cst_5 = arith.constant 0.000000e+00 : f32
    %6 = vector.broadcast %cst_5 : f32 to vector<16x128xf32>
    %7 = arith.maximumf %5, %6 : vector<16x128xf32>
    %8 = arith.truncf %7 : vector<16x128xf32> to vector<16x128xbf16>
    %c0_6 = arith.constant 0 : index
    %c0_7 = arith.constant 0 : index
    %9 = vector.load %arg4[%c0_6, %c0_7] : memref<128x256xbf16, #tpu.memory_space<vmem>>, vector<128x256xbf16>
    %cst_8 = arith.constant dense<0.000000e+00> : vector<16x256xf32>
    %10 = tpu.matmul %8, %9, %cst_8 {dimension_numbers = #tpu.dot_dimension_numbers<[1], [0], [0], [1], [0, 0, 1, 1], [], []>} : vector<16x128xbf16>, vector<128x256xbf16>, vector<16x256xf32> -> vector<16x256xf32>
    %c0_9 = arith.constant 0 : index
    %c0_10 = arith.constant 0 : index
    %11 = vector.load %arg5[%c0_9, %c0_10] : memref<1x256xf32, #tpu.memory_space<vmem>>, vector<1x256xf32>
    %12 = vector.broadcast %11 : vector<1x256xf32> to vector<16x256xf32>
    %13 = arith.addf %10, %12 : vector<16x256xf32>
    %cst_11 = arith.constant 0.000000e+00 : f32
    %14 = vector.broadcast %cst_11 : f32 to vector<16x256xf32>
    %15 = arith.maximumf %13, %14 : vector<16x256xf32>
    %16 = arith.truncf %15 : vector<16x256xf32> to vector<16x256xbf16>
    %c0_12 = arith.constant 0 : index
    %c0_13 = arith.constant 0 : index
    %17 = vector.load %arg6[%c0_12, %c0_13] : memref<256x256xbf16, #tpu.memory_space<vmem>>, vector<256x256xbf16>
    %cst_14 = arith.constant dense<0.000000e+00> : vector<16x256xf32>
    %18 = tpu.matmul %16, %17, %cst_14 {dimension_numbers = #tpu.dot_dimension_numbers<[1], [0], [0], [1], [0, 0, 1, 1], [], []>} : vector<16x256xbf16>, vector<256x256xbf16>, vector<16x256xf32> -> vector<16x256xf32>
    %c0_15 = arith.constant 0 : index
    %c0_16 = arith.constant 0 : index
    %19 = vector.load %arg7[%c0_15, %c0_16] : memref<1x256xf32, #tpu.memory_space<vmem>>, vector<1x256xf32>
    %20 = vector.broadcast %19 : vector<1x256xf32> to vector<16x256xf32>
    %21 = arith.addf %18, %20 : vector<16x256xf32>
    %cst_17 = arith.constant 0.000000e+00 : f32
    %22 = vector.broadcast %cst_17 : f32 to vector<16x256xf32>
    %23 = arith.maximumf %21, %22 : vector<16x256xf32>
    %24 = arith.truncf %23 : vector<16x256xf32> to vector<16x256xbf16>
    %c0_18 = arith.constant 0 : index
    %c0_19 = arith.constant 0 : index
    %25 = vector.load %arg8[%c0_18, %c0_19] : memref<256x128xbf16, #tpu.memory_space<vmem>>, vector<256x128xbf16>
    %cst_20 = arith.constant dense<0.000000e+00> : vector<16x128xf32>
    %26 = tpu.matmul %24, %25, %cst_20 {dimension_numbers = #tpu.dot_dimension_numbers<[1], [0], [0], [1], [0, 0, 1, 1], [], []>} : vector<16x256xbf16>, vector<256x128xbf16>, vector<16x128xf32> -> vector<16x128xf32>
    %c0_21 = arith.constant 0 : index
    %c0_22 = arith.constant 0 : index
    %27 = vector.load %arg9[%c0_21, %c0_22] : memref<1x128xf32, #tpu.memory_space<vmem>>, vector<1x128xf32>
    %28 = vector.broadcast %27 : vector<1x128xf32> to vector<16x128xf32>
    %29 = arith.addf %26, %28 : vector<16x128xf32>
    %cst_23 = arith.constant 0.000000e+00 : f32
    %30 = vector.broadcast %cst_23 : f32 to vector<16x128xf32>
    %31 = arith.maximumf %29, %30 : vector<16x128xf32>
    %32 = arith.truncf %31 : vector<16x128xf32> to vector<16x128xbf16>
    %c0_24 = arith.constant 0 : index
    %c0_25 = arith.constant 0 : index
    %33 = vector.load %arg10[%c0_24, %c0_25] : memref<128x1xbf16, #tpu.memory_space<vmem>>, vector<128x1xbf16>
    %cst_26 = arith.constant dense<0.000000e+00> : vector<16x1xf32>
    %34 = tpu.matmul %32, %33, %cst_26 {dimension_numbers = #tpu.dot_dimension_numbers<[1], [0], [0], [1], [0, 0, 1, 1], [], []>} : vector<16x128xbf16>, vector<128x1xbf16>, vector<16x1xf32> -> vector<16x1xf32>
    %c0_27 = arith.constant 0 : index
    %c0_28 = arith.constant 0 : index
    %35 = vector.load %arg11[%c0_27, %c0_28] : memref<1x1xf32, #tpu.memory_space<vmem>>, vector<1x1xf32>
    %36 = vector.broadcast %35 : vector<1x1xf32> to vector<16x1xf32>
    %37 = arith.addf %34, %36 : vector<16x1xf32>
    %c0_29 = arith.constant 0 : index
    %c0_30 = arith.constant 0 : index
    %38 = vector.load %arg12[%c0_29, %c0_30] : memref<16x1xf32, #tpu.memory_space<vmem>>, vector<16x1xf32>
    tpu.vector_store %arg12[%c0_29, %c0_30], %37 {strides = array<i32>} : memref<16x1xf32, #tpu.memory_space<vmem>>, vector<16x1xf32>,
    return
  }
  func.func @transform_0(%arg0: i32) -> (i32, i32) {
    %c0_i32 = arith.constant 0 : i32
    %c0_i32_0 = arith.constant 0 : i32
    return %arg0, %c0_i32 : i32, i32
  }
  func.func @transform_1(%arg0: i32) -> (i32, i32) {
    %c0_i32 = arith.constant 0 : i32
    %c0_i32_0 = arith.constant 0 : i32
    %c0_i32_1 = arith.constant 0 : i32
    return %c0_i32, %c0_i32_0 : i32, i32
  }
  func.func @transform_2(%arg0: i32) -> (i32, i32) {
    %c0_i32 = arith.constant 0 : i32
    %c0_i32_0 = arith.constant 0 : i32
    %c0_i32_1 = arith.constant 0 : i32
    return %c0_i32, %c0_i32_0 : i32, i32
  }
  func.func @transform_3(%arg0: i32) -> (i32, i32) {
    %c0_i32 = arith.constant 0 : i32
    %c0_i32_0 = arith.constant 0 : i32
    %c0_i32_1 = arith.constant 0 : i32
    return %c0_i32, %c0_i32_0 : i32, i32
  }
  func.func @transform_4(%arg0: i32) -> (i32, i32) {
    %c0_i32 = arith.constant 0 : i32
    %c0_i32_0 = arith.constant 0 : i32
    %c0_i32_1 = arith.constant 0 : i32
    return %c0_i32, %c0_i32_0 : i32, i32
  }
  func.func @transform_5(%arg0: i32) -> (i32, i32) {
    %c0_i32 = arith.constant 0 : i32
    %c0_i32_0 = arith.constant 0 : i32
    %c0_i32_1 = arith.constant 0 : i32
    return %c0_i32, %c0_i32_0 : i32, i32
  }
  func.func @transform_6(%arg0: i32) -> (i32, i32) {
    %c0_i32 = arith.constant 0 : i32
    %c0_i32_0 = arith.constant 0 : i32
    %c0_i32_1 = arith.constant 0 : i32
    return %c0_i32, %c0_i32_0 : i32, i32
  }
  func.func @transform_7(%arg0: i32) -> (i32, i32) {
    %c0_i32 = arith.constant 0 : i32
    %c0_i32_0 = arith.constant 0 : i32
    %c0_i32_1 = arith.constant 0 : i32
    return %c0_i32, %c0_i32_0 : i32, i32
  }
  func.func @transform_8(%arg0: i32) -> (i32, i32) {
    %c0_i32 = arith.constant 0 : i32
    %c0_i32_0 = arith.constant 0 : i32
    %c0_i32_1 = arith.constant 0 : i32
    return %c0_i32, %c0_i32_0 : i32, i32
  }
  func.func @transform_9(%arg0: i32) -> (i32, i32) {
    %c0_i32 = arith.constant 0 : i32
    %c0_i32_0 = arith.constant 0 : i32
    %c0_i32_1 = arith.constant 0 : i32
    return %c0_i32, %c0_i32_0 : i32, i32
  }
  func.func @transform_10(%arg0: i32) -> (i32, i32) {
    %c0_i32 = arith.constant 0 : i32
    %c0_i32_0 = arith.constant 0 : i32
    %c0_i32_1 = arith.constant 0 : i32
    return %c0_i32, %c0_i32_0 : i32, i32
  }
  func.func @transform_11(%arg0: i32) -> (i32, i32) {
    %c0_i32 = arith.constant 0 : i32
    %c0_i32_0 = arith.constant 0 : i32
    return %arg0, %c0_i32 : i32, i32
  }
}

</mosaic_0001>

<bundles_post_ra>
// kernel: tpu_custom_call.1
= control target key start
LH: loop header
LB: loop body
LE: loop exit
PB: predicated region body
PF: predicated region fallthrough
CT: control target
= control target key end

     0   :  { %s1322_s0 = inlined_call_operand.vmem [shape: bf16[16,13], index: 0, kind: input, shape index: {}]   ;;  %s1323_s1 = inlined_call_operand.vmem [shape: bf16[13,128], index: 1, kind: input, shape index: {}]   ;;  %s1324_s2 = inlined_call_operand.vmem [shape: f32[1,128], index: 2, kind: input, shape index: {}]   ;;  %s1325_s3 = inlined_call_operand.hbm [shape: bf16[128,256], index: 3, kind: input, shape index: {}]   ;;  %s1326_s4 = inlined_call_operand.vmem [shape: f32[1,256], index: 4, kind: input, shape index: {}]   ;;  %s1327_s5 = inlined_call_operand.hbm [shape: bf16[256,256], index: 5, kind: input, shape index: {}]   ;;  %s1328_s6 = inlined_call_operand.vmem [shape: f32[1,256], index: 6, kind: input, shape index: {}]   ;;  %s1329_s7 = inlined_call_operand.hbm [shape: bf16[256,128], index: 7, kind: input, shape index: {}]   ;;  %s1330_s8 = inlined_call_operand.vmem [shape: f32[1,128], index: 8, kind: input, shape index: {}]   ;;  %s1331_s9 = inlined_call_operand.vmem [shape: bf16[128,1], index: 9, kind: input, shape index: {}]   ;;  %s1332_s10 = inlined_call_operand.<no memory space> [shape: f32[1,1], index: 10, kind: input, shape index: {}]   ;;  %s1333_s11 = inlined_call_operand.vmem [shape: f32[16,1], index: 11, kind: output, shape index: {}]  }
   0x1   :  { %v16_v0 = vstv %s1332_s10 }
   0x2   :  { %17 = vst [vmem:[#allocation2] sm:$0x1] %v16_v0 }
   0x3   :  { %18 = vsyncpa [#allocation4], 0 }
   0x4   :  { %19 = vsyncpa [#allocation6], 0  ;;  %s1178_s19 = smov [#allocation5]   ;;  %s1179_s21 = smov [#allocation3]  }
   0x5   :  { %s45_s20 = sshll.u32 %s1178_s19, 4  ;;  %s31_s22 = sshll.u32 %s1179_s21, 4  ;;  %s46_s20 = int_to_ptr.vmem [resolvable:$true] %s45_s20  ;;  %s32_s22 = int_to_ptr.vmem [resolvable:$true] %s31_s22 }
   0x6   :  { %s1122_s23 = scalar_lea.vmem %s46_s20, 4096  ;;  %p1127_p1 = scmp.lt.s32.totalorder %s46_s20, %s46_s20 }
   0x7   :  { %p1123_p0 = scmp.ne.s32.totalorder %s46_s20, %s1122_s23  ;;  %p1128_p2 = scmp.lt.s32.totalorder %s1122_s23, %s1122_s23 }
   0x9   :  { %p1129_p3 = por %p1128_p2, %p1127_p1 }
   0xb   :  { %p1130_p4 = pnand %p1129_p3, %p1123_p0 }
   0xd   :  { %1133 = shalt.err (!%p1130_p4)
}
   0xe   :  { %s1180_s24 = smov 128   ;;  %s1181_s25 = smov 8  }
   0xf   :  { %51 = dma.hbm_to_vmem [thread:$0]  %s1327_s5, 4096, %s46_s20, [#allocation6], %s1180_s24, %s1180_s24, %s1181_s25  }
  0x10   :  { %s1142_s27 = scalar_lea.vmem %s32_s22, 2048  ;;  %p1147_p6 = scmp.lt.s32.totalorder %s32_s22, %s32_s22 }
  0x11   :  { %p1143_p5 = scmp.ne.s32.totalorder %s32_s22, %s1142_s27  ;;  %p1148_p7 = scmp.lt.s32.totalorder %s1142_s27, %s1142_s27 }
  0x13   :  { %p1149_p8 = por %p1148_p7, %p1147_p6 }
  0x15   :  { %p1150_p9 = pnand %p1149_p8, %p1143_p5 }
  0x17   :  { %1153 = shalt.err (!%p1150_p9)
}
  0x18   :  { %37 = dma.hbm_to_vmem [thread:$0]  %s1325_s3, 2048, %s32_s22, [#allocation4], %s1180_s24, %s1180_s24, %s1181_s25  }
  0x19   :  { %s1182_s30 = smov [#allocation7]  }
  0x1a   :  { %s59_s12 = sshll.u32 %s1182_s30, 4  ;;  %s60_s12 = int_to_ptr.vmem [resolvable:$true] %s59_s12 }
  0x1b   :  { %s1162_s13 = scalar_lea.vmem %s60_s12, 2048  ;;  %p1167_p11 = scmp.lt.s32.totalorder %s60_s12, %s60_s12 }
  0x1c   :  { %p1163_p10 = scmp.ne.s32.totalorder %s60_s12, %s1162_s13  ;;  %p1168_p12 = scmp.lt.s32.totalorder %s1162_s13, %s1162_s13 }
  0x1e   :  { %p1169_p13 = por %p1168_p12, %p1167_p11 }
  0x20   :  { %p1170_p0 = pnand %p1169_p13, %p1163_p10 }
  0x22   :  { %1173 = shalt.err (!%p1170_p0)
}
  0x23   :  { %s1183_s5 = smov 64   ;;  %s1184_s14 = smov 4  }
  0x24   :  { %65 = dma.hbm_to_vmem [thread:$0]  %s1329_s7, 2048, %s60_s12, [#allocation6], %s1183_s5, %s1183_s5, %s1184_s14  }
  0x25   :  { %1174 = dma.done.wait [#allocation4], 2048  }
  0x26   :  { %1175 = vsyncadd [#allocation4], 4294965248 }
  0x27   :  { %1176 = dma.done.wait [#allocation6], 6144  }
  0x28   :  { %1177 = vsyncadd [#allocation6], 4294961152  ;;  %vm107_vm0 = vcmask 1045504   ;;  %v1185_v1 = vmov 0.0   ;;  %vm1186_vm1 = vmmov 0   ;;  %vm108_vm2 = vcmask 1046528  }
  0x29   :  { %979 = vmatprep.subr.bf16.mxu0 %v1185_v1  ;;  %981 = vmatprep.mubr.msk.bf16.mxu0 %vm1186_vm1, %v1185_v1  ;;  %v1187_v2 = vmov 65535   ;;  %v1016_v5 = vld [vmem:[%s1323_s1] sm:$0x7f]   ;;  %v1020_v9 = vld [vmem:[#allocation3 + $0x70] ss:$8 sps:$4 sm:$0xff]   ;;  %vm103_vm3 = vcmask 105472  }
  0x2a   :  { %v109_v3 = vsel %vm107_vm0, 4294967295, %v1187_v2  ;;  %v1017_v6 = vld [vmem:[%s1322_s0] sm:$0xff]   ;;  %v1026_v13 = vld [vmem:[#allocation3 + $0x50] ss:$8 sps:$4 sm:$0xff]   ;;  %v1188_v24 = vmov 0   ;;  %vm859_vm4 = vcmask 7168  }
  0x2b   :  { %v110_v4 = vsel %vm108_vm2, %v109_v3, 0  ;;  %v1018_v8 = vld [vmem:[#allocation3 + $0x74] ss:$8 sps:$4 sm:$0xff]   ;;  %v1021_v10 = vld [vmem:[#allocation3 + $0x64] ss:$8 sps:$4 sm:$0xff]   ;;  %298 = vmatprep.mubr.bf16.mxu1 %v1188_v24 }
  0x2c   :  { %v112_v7 = vand.u32 %v1016_v5, %v110_v4  ;;  %266 = vmatprep.subr.bf16.mxu1 %v1018_v8  ;;  %v1023_v11 = vld [vmem:[#allocation3 + $0x60] ss:$8 sps:$4 sm:$0xff]   ;;  %v1024_v12 = vld [vmem:[#allocation3 + $0x54] ss:$8 sps:$4 sm:$0xff]   ;;  %v1027_v14 = vld [vmem:[#allocation3 + $0x44] ss:$8 sps:$4 sm:$0xff]  }
  0x2d   :  { %267 = vmatpush1.bf16.msra.mxu1 %v1020_v9  ;;  %v1029_v15 = vld [vmem:[#allocation3 + $0x40] ss:$8 sps:$4 sm:$0xff]   ;;  %v1030_v16 = vld [vmem:[#allocation3 + $0x34] ss:$8 sps:$4 sm:$0xff]   ;;  %v1032_v17 = vld [vmem:[#allocation3 + $0x30] ss:$8 sps:$4 sm:$0xff]  }
  0x2e   :  { %980 = vmatpush3.bf16.msra.mxu0 %v112_v7  ;;  %268 = vmatprep.subr.bf16.mxu1 %v1021_v10  ;;  %v1033_v18 = vld [vmem:[#allocation3 + $0x24] ss:$8 sps:$4 sm:$0xff]   ;;  %v1035_v19 = vld [vmem:[#allocation3 + $0x20] ss:$8 sps:$4 sm:$0xff]   ;;  %v1036_v20 = vld [vmem:[#allocation3 + $0x14] ss:$8 sps:$4 sm:$0xff]  }
  0x2f   :  { %v1038_v21 = vld [vmem:[#allocation3 + $0x10] ss:$8 sps:$4 sm:$0xff]   ;;  %v1039_v22 = vld [vmem:[#allocation3 + $0x4] ss:$8 sps:$4 sm:$0xff]   ;;  %v1041_v23 = vld [vmem:[#allocation3] ss:$8 sps:$4 sm:$0xff]  }
  0x30   :  { %v1042_v25 = vld [vmem:[#allocation5 + $0x70] ss:$8 sps:$4 sm:$0xff]   ;;  %v1044_v26 = vld [vmem:[#allocation5 + $0x74] ss:$8 sps:$4 sm:$0xff]   ;;  %v1047_v27 = vld [vmem:[#allocation5 + $0x64] ss:$8 sps:$4 sm:$0xff]  }
  0x31   :  { %982 = vmatmul.mubr.msk.bf16.vlgmr.msra.gmra.mxu0 %vm103_vm3, %v1017_v6  ;;  %269 = vmatpush1.bf16.msra.mxu1 %v1023_v11  ;;  %v1045_v28 = vld [vmem:[#allocation5 + $0x60] ss:$8 sps:$4 sm:$0xff]   ;;  %v1050_v29 = vld [vmem:[#allocation5 + $0x54] ss:$8 sps:$4 sm:$0xff]   ;;  %v1048_v30 = vld [vmem:[#allocation5 + $0x50] ss:$8 sps:$4 sm:$0xff]  }
  0x32   :  { %270 = vmatprep.subr.bf16.mxu1 %v1024_v12  ;;  %519 = vmatprep.subr.bf16.mxu0 %v1044_v26  ;;  %v1053_v31 = vld [vmem:[#allocation5 + $0x44] ss:$8 sps:$4 sm:$0xff]   ;;  %v1051_v32 = vld [vmem:[#allocation5 + $0x40] ss:$8 sps:$4 sm:$0xff]   ;;  %v1056_v33 = vld [vmem:[#allocation5 + $0x34] ss:$8 sps:$4 sm:$0xff]  }
  0x33   :  { %520 = vmatpush1.bf16.msra.mxu0 %v1042_v25  ;;  %v1054_v34 = vld [vmem:[#allocation5 + $0x30] ss:$8 sps:$4 sm:$0xff]   ;;  %v1059_v35 = vld [vmem:[#allocation5 + $0x24] ss:$8 sps:$4 sm:$0xff]   ;;  %v1057_v36 = vld [vmem:[#allocation5 + $0x20] ss:$8 sps:$4 sm:$0xff]  }
  0x34   :  { %521 = vmatprep.subr.bf16.mxu0 %v1047_v27  ;;  %v1062_v37 = vld [vmem:[#allocation5 + $0x14] ss:$8 sps:$4 sm:$0xff]   ;;  %v1060_v38 = vld [vmem:[#allocation5 + $0x10] ss:$8 sps:$4 sm:$0xff]   ;;  %v1065_v39 = vld [vmem:[#allocation5 + $0x4] ss:$8 sps:$4 sm:$0xff]  }
  0x35   :  { %271 = vmatpush1.bf16.msra.mxu1 %v1026_v13  ;;  %v1063_v40 = vld [vmem:[#allocation5] ss:$8 sps:$4 sm:$0xff]   ;;  %v1068_v41 = vld [vmem:[#allocation5 + $0xf4] ss:$8 sps:$4 sm:$0xff]   ;;  %v1066_v42 = vld [vmem:[#allocation5 + $0xf0] ss:$8 sps:$4 sm:$0xff]  }
  0x36   :  { %272 = vmatprep.subr.bf16.mxu1 %v1027_v14  ;;  %v1071_v43 = vld [vmem:[#allocation5 + $0xe4] ss:$8 sps:$4 sm:$0xff]   ;;  %v1069_v44 = vld [vmem:[#allocation5 + $0xe0] ss:$8 sps:$4 sm:$0xff]   ;;  %v1074_v45 = vld [vmem:[#allocation5 + $0xd4] ss:$8 sps:$4 sm:$0xff]   ;;  %v176_v14 = vlaneseq }
  0x37   :  { %522 = vmatpush1.bf16.msra.mxu0 %v1045_v28  ;;  %v1072_v46 = vld [vmem:[#allocation5 + $0xd0] ss:$8 sps:$4 sm:$0xff]   ;;  %v1077_v47 = vld [vmem:[#allocation5 + $0xc4] ss:$8 sps:$4 sm:$0xff]   ;;  %v1075_v48 = vld [vmem:[#allocation5 + $0xc0] ss:$8 sps:$4 sm:$0xff]  }
  0x38   :  { %523 = vmatprep.subr.bf16.mxu0 %v1050_v29  ;;  %v1080_v49 = vld [vmem:[#allocation5 + $0xb4] ss:$8 sps:$4 sm:$0xff]   ;;  %v1078_v50 = vld [vmem:[#allocation5 + $0xb0] ss:$8 sps:$4 sm:$0xff]   ;;  %v1083_v61 = vld [vmem:[#allocation5 + $0xa4] ss:$8 sps:$4 sm:$0xff]  }
  0x39   :  { %273 = vmatpush1.bf16.msra.mxu1 %v1029_v15  ;;  %v868_v51 = vld [vmem:[%s1324_s2] ss:$0 sm:$0xff]  ;;  %v1081_v62 = vld [vmem:[#allocation5 + $0xa0] ss:$8 sps:$4 sm:$0xff]   ;;  %v1084_v0 = vld [vmem:[#allocation5 + $0x90] ss:$8 sps:$4 sm:$0xff]  }
  0x3a   :  { %274 = vmatprep.subr.bf16.mxu1 %v1030_v16  ;;  %v1086_v63 = vld [vmem:[#allocation5 + $0x94] ss:$8 sps:$4 sm:$0xff]   ;;  %v1089_v2 = vld [vmem:[#allocation5 + $0x84] ss:$8 sps:$4 sm:$0xff]   ;;  %v1087_v3 = vld [vmem:[#allocation5 + $0x80] ss:$8 sps:$4 sm:$0xff]  }
  0x3b   :  { %524 = vmatpush1.bf16.msra.mxu0 %v1048_v30  ;;  %v1090_v4 = vld [vmem:[#allocation7 + $0x78] sm:$0xff]   ;;  %v1092_v6 = vld [vmem:[#allocation7 + $0x70] sm:$0xff]   ;;  %v1094_v8 = vld [vmem:[#allocation7 + $0x68] sm:$0xff]   ;;  %v177_v15 = vshrl.u32 %v176_v14, 7 }
  0x3c   :  { %525 = vmatprep.subr.bf16.mxu0 %v1053_v31  ;;  %v1091_v5 = vld [vmem:[#allocation7 + $0x38] sm:$0xff]   ;;  %v1093_v7 = vld [vmem:[#allocation7 + $0x30] sm:$0xff]   ;;  %v1095_v9 = vld [vmem:[#allocation7 + $0x28] sm:$0xff]  }
  0x3d   :  { %275 = vmatpush1.bf16.msra.mxu1 %v1032_v17  ;;  %v1096_v10 = vld [vmem:[#allocation7 + $0x60] sm:$0xff]   ;;  %v1098_v12 = vld [vmem:[#allocation7 + $0x58] sm:$0xff]   ;;  %v182_v16 = vsub.s32 1, %v177_v15  ;;  %v178_v17 = vsub.s32 0, %v177_v15 }
  0x3e   :  { %276 = vmatprep.subr.bf16.mxu1 %v1033_v18  ;;  %v1097_v11 = vld [vmem:[#allocation7 + $0x20] sm:$0xff]   ;;  %v1099_v13 = vld [vmem:[#allocation7 + $0x18] sm:$0xff]  }
  0x3f   :  { %526 = vmatpush1.bf16.msra.mxu0 %v1051_v32  ;;  %v174_v18 = vld [vmem:[%s1326_s4] sm:$0x3] }
  0x40   :  { %527 = vmatprep.subr.bf16.mxu0 %v1056_v33  ;;  %v937_v14 = vld [vmem:[#allocation2] ss:$0 sm:$0xff] }
  0x41   :  { %277 = vmatpush1.bf16.msra.mxu1 %v1035_v19 }
  0x42   :  { %278 = vmatprep.subr.bf16.mxu1 %v1036_v20  ;;  %v183_v20 = vrot.slane %v174_v18, %v182_v16 }
  0x43   :  { %528 = vmatpush1.bf16.msra.mxu0 %v1054_v34 }
  0x44   :  { %529 = vmatprep.subr.bf16.mxu0 %v1059_v35  ;;  %v1100_v35 = vld [vmem:[#allocation7 + $0x50] sm:$0xff]  }
  0x45   :  { %279 = vmatpush1.bf16.msra.mxu1 %v1038_v21  ;;  %v179_v21 = vrot.slane %v174_v18, %v178_v17 }
  0x46   :  { %280 = vmatprep.subr.bf16.mxu1 %v1039_v22 }
  0x47   :  { %530 = vmatpush1.bf16.msra.mxu0 %v1057_v36  ;;  %v1101_v36 = vld [vmem:[#allocation7 + $0x10] sm:$0xff]  }
  0x48   :  { %531 = vmatprep.subr.bf16.mxu0 %v1062_v37  ;;  %v1102_v37 = vld [vmem:[#allocation7 + $0x48] sm:$0xff]  }
  0x49   :  { %281 = vmatpush1.bf16.msra.mxu1 %v1041_v23 }
  0x4a   :  { %948 = vmatprep.subr.bf16.mxu1 %v1090_v4 }
  0x4b   :  { %532 = vmatpush1.bf16.msra.mxu0 %v1060_v38  ;;  %v1103_v38 = vld [vmem:[#allocation7 + $0x8] sm:$0xff]  }
  0x4c   :  { %533 = vmatprep.subr.bf16.mxu0 %v1065_v39  ;;  %v1104_v39 = vld [vmem:[#allocation7 + $0x40] sm:$0xff]  }
  0x4f   :  { %534 = vmatpush1.bf16.msra.mxu0 %v1063_v40  ;;  %v1105_v40 = vld [vmem:[#allocation7] sm:$0xff]  }
  0x50   :  { %535 = vmatprep.subr.bf16.mxu0 %v1068_v41  ;;  %v347_v41 = vld [vmem:[%s1328_s6] sm:$0x3] }
  0x53   :  { %536 = vmatpush2.bf16.msra.mxu0 %v1066_v42 }
  0x54   :  { %537 = vmatprep.subr.bf16.mxu0 %v1071_v43  ;;  %v356_v43 = vrot.slane %v347_v41, %v182_v16 }
  0x57   :  { %538 = vmatpush2.bf16.msra.mxu0 %v1069_v44  ;;  %v352_v44 = vrot.slane %v347_v41, %v178_v17 }
  0x58   :  { %539 = vmatprep.subr.bf16.mxu0 %v1074_v45 }
  0x5b   :  { %540 = vmatpush2.bf16.msra.mxu0 %v1072_v46 }
  0x5c   :  { %541 = vmatprep.subr.bf16.mxu0 %v1077_v47 }
  0x5f   :  { %542 = vmatpush2.bf16.msra.mxu0 %v1075_v48 }
  0x60   :  { %543 = vmatprep.subr.bf16.mxu0 %v1080_v49 }
  0x63   :  { %544 = vmatpush2.bf16.msra.mxu0 %v1078_v50 }
  0x64   :  { %545 = vmatprep.subr.bf16.mxu0 %v1083_v61  ;;  %v1109_v61 = vld [vmem:[%s1331_s9 + $0x20] sm:$0xff]  }
  0x67   :  { %546 = vmatpush2.bf16.msra.mxu0 %v1081_v62  ;;  %v1110_v62 = vld [vmem:[%s1331_s9 + $0x18] sm:$0xff]  }
  0x68   :  { %547 = vmatprep.subr.bf16.mxu0 %v1086_v63  ;;  %v1111_v63 = vld [vmem:[%s1331_s9 + $0x10] sm:$0xff]  }
  0x6b   :  { %548 = vmatpush2.bf16.msra.mxu0 %v1084_v0  ;;  %v1112_v0 = vld [vmem:[%s1331_s9 + $0x8] sm:$0xff]  }
  0x6c   :  { %549 = vmatprep.subr.bf16.mxu0 %v1089_v2  ;;  %v1113_v2 = vld [vmem:[%s1331_s9] sm:$0xff]  }
  0x6f   :  { %550 = vmatpush2.bf16.msra.mxu0 %v1087_v3 }
  0xf1   :  { %v148_v52 = vpop.f32.mrf.mxu0 }
  0xf2   :  { %v149_v54 = vadd.f32 %v868_v51, %v148_v52 }
  0xf3   :  { %v983_v53 = vpop.f32.mrf.mxu0 }
  0xf4   :  { %v155_v58 = vmax.f32 %v149_v54, 0.0 }
  0xf5   :  { %v151_v55 = vpop.f32.mrf.mxu0 }
  0xf6   :  { %v152_v56 = vadd.f32 %v868_v51, %v151_v55 }
  0xf7   :  { %v984_v57 = vpop.f32.mrf.mxu0 }
  0xf8   :  { %v156_v59 = vmax.f32 %v152_v56, 0.0  ;;  %v1106_v57 = vld [vmem:[%s1331_s9 + $0x38] sm:$0xff]  }
  0xfa   :  { %v157_v60 = vpack.c.bf16 %v156_v59, %v155_v58  ;;  %v1107_v59 = vld [vmem:[%s1331_s9 + $0x30] sm:$0xff]  }
  0xfc   :  { %299 = vmatmul.mubr.bf16.vlgmr.msra.gmra.mxu1 %v157_v60  ;;  %v1108_v60 = vld [vmem:[%s1331_s9 + $0x28] sm:$0xff]  }
  0xfd   :  { %949 = vmatpush3.bf16.msra.mxu1 %v1091_v5 }
  0xfe   :  { %950 = vmatprep.subr.bf16.mxu1 %v1092_v6  ;;  %v920_v6 = vld [vmem:[%s1330_s8] ss:$0 sm:$0xff] }
 0x101   :  { %951 = vmatpush3.bf16.msra.mxu1 %v1093_v7 }
 0x102   :  { %952 = vmatprep.subr.bf16.mxu1 %v1094_v8 }
 0x105   :  { %953 = vmatpush3.bf16.msra.mxu1 %v1095_v9 }
 0x106   :  { %954 = vmatprep.subr.bf16.mxu1 %v1096_v10 }
 0x109   :  { %955 = vmatpush3.bf16.msra.mxu1 %v1097_v11 }
 0x10a   :  { %956 = vmatprep.subr.bf16.mxu1 %v1098_v12 }
 0x10d   :  { %957 = vmatpush3.bf16.msra.mxu1 %v1099_v13 }
 0x10e   :  { %958 = vmatprep.subr.bf16.mxu1 %v1100_v35 }
 0x111   :  { %959 = vmatpush3.bf16.msra.mxu1 %v1101_v36 }
 0x112   :  { %960 = vmatprep.subr.bf16.mxu1 %v1102_v37 }
 0x115   :  { %961 = vmatpush3.bf16.msra.mxu1 %v1103_v38 }
 0x116   :  { %962 = vmatprep.subr.bf16.mxu1 %v1104_v39 }
 0x119   :  { %963 = vmatpush3.bf16.msra.mxu1 %v1105_v40 }
 0x11a   :  { %985 = vmatprep.subr.bf16.mxu1 %v1185_v1 }
 0x1bc   :  { %v300_v19 = vpop.f32.mrf.mxu1 }
 0x1bd   :  { %v301_v26 = vadd.f32 %v300_v19, %v179_v21 }
 0x1be   :  { %v302_v22 = vpop.f32.mrf.mxu1 }
 0x1bf   :  { %v303_v24 = vadd.f32 %v302_v22, %v183_v20  ;;  %v309_v32 = vmax.f32 %v301_v26, 0.0 }
 0x1c0   :  { %v304_v23 = vpop.f32.mrf.mxu1 }
 0x1c1   :  { %v305_v25 = vadd.f32 %v304_v23, %v179_v21  ;;  %v310_v30 = vmax.f32 %v303_v24, 0.0 }
 0x1c2   :  { %v306_v27 = vpop.f32.mrf.mxu1 }
 0x1c3   :  { %v307_v28 = vadd.f32 %v306_v27, %v183_v20  ;;  %v311_v29 = vmax.f32 %v305_v25, 0.0 }
 0x1c5   :  { %v312_v31 = vmax.f32 %v307_v28, 0.0  ;;  %v313_v34 = vpack.c.bf16 %v311_v29, %v309_v32 }
 0x1c7   :  { %v314_v33 = vpack.c.bf16 %v312_v31, %v310_v30 }
 0x1c9   :  { %551 = vmatprep.mubr.bf16.mxu0 %v314_v33 }
 0x1ca   :  { %552 = vmatmul.mubr.bf16.vlgmr.msra.gmra.mxu0 %v313_v34 }
 0x28a   :  { %v553_v42 = vpop.f32.mrf.mxu0 }
 0x28b   :  { %v554_v49 = vadd.f32 %v553_v42, %v352_v44 }
 0x28c   :  { %v555_v45 = vpop.f32.mrf.mxu0 }
 0x28d   :  { %v556_v47 = vadd.f32 %v555_v45, %v356_v43  ;;  %v562_v55 = vmax.f32 %v554_v49, 0.0 }
 0x28e   :  { %v557_v46 = vpop.f32.mrf.mxu0 }
 0x28f   :  { %v558_v48 = vadd.f32 %v557_v46, %v352_v44  ;;  %v563_v53 = vmax.f32 %v556_v47, 0.0 }
 0x290   :  { %v559_v50 = vpop.f32.mrf.mxu0 }
 0x291   :  { %v560_v51 = vadd.f32 %v559_v50, %v356_v43  ;;  %v564_v52 = vmax.f32 %v558_v48, 0.0 }
 0x293   :  { %v565_v54 = vmax.f32 %v560_v51, 0.0  ;;  %v566_v58 = vpack.c.bf16 %v564_v52, %v562_v55 }
 0x295   :  { %v567_v56 = vpack.c.bf16 %v565_v54, %v563_v53 }
 0x297   :  { %735 = vmatprep.mubr.bf16.mxu1 %v567_v56 }
 0x298   :  { %736 = vmatmul.mubr.bf16.vlgmr.msra.gmra.mxu1 %v566_v58 }
 0x299   :  { %986 = vmatpush3.bf16.msra.mxu1 %v1106_v57  ;;  %1001 = vmatprep.mubr.msk.bf16.mxu1 %vm1186_vm1, %v1185_v1 }
 0x29a   :  { %987 = vmatprep.subr.bf16.mxu1 %v1185_v1 }
 0x29d   :  { %988 = vmatpush3.bf16.msra.mxu1 %v1107_v59 }
 0x29e   :  { %989 = vmatprep.subr.bf16.mxu1 %v1185_v1 }
 0x2a1   :  { %990 = vmatpush3.bf16.msra.mxu1 %v1108_v60 }
 0x2a2   :  { %991 = vmatprep.subr.bf16.mxu1 %v1185_v1 }
 0x2a5   :  { %992 = vmatpush3.bf16.msra.mxu1 %v1109_v61 }
 0x2a6   :  { %993 = vmatprep.subr.bf16.mxu1 %v1185_v1 }
 0x2a9   :  { %994 = vmatpush3.bf16.msra.mxu1 %v1110_v62 }
 0x2aa   :  { %995 = vmatprep.subr.bf16.mxu1 %v1185_v1 }
 0x2ad   :  { %996 = vmatpush3.bf16.msra.mxu1 %v1111_v63 }
 0x2ae   :  { %997 = vmatprep.subr.bf16.mxu1 %v1185_v1 }
 0x2b1   :  { %998 = vmatpush3.bf16.msra.mxu1 %v1112_v0 }
 0x2b2   :  { %999 = vmatprep.subr.bf16.mxu1 %v1185_v1 }
 0x2b5   :  { %1000 = vmatpush3.bf16.msra.mxu1 %v1113_v2 }
 0x358   :  { %v964_v3 = vpop.f32.mrf.mxu1 }
 0x35a   :  { %v965_v4 = vpop.f32.mrf.mxu1 }
 0x35b   :  { %v966_v5 = vadd.f32 %v965_v4, %v964_v3 }
 0x35c   :  { %v967_v7 = vpop.f32.mrf.mxu1 }
 0x35d   :  { %v738_v9 = vadd.f32 %v966_v5, %v920_v6 }
 0x35e   :  { %v968_v8 = vpop.f32.mrf.mxu1 }
 0x35f   :  { %v969_v10 = vadd.f32 %v968_v8, %v967_v7  ;;  %v744_v12 = vmax.f32 %v738_v9, 0.0 }
 0x361   :  { %v741_v11 = vadd.f32 %v969_v10, %v920_v6 }
 0x363   :  { %v745_v13 = vmax.f32 %v741_v11, 0.0 }
 0x365   :  { %v746_v1 = vpack.c.bf16 %v745_v13, %v744_v12 }
 0x367   :  { %1002 = vmatmul.mubr.bf16.vlgmr.msra.gmra.mxu1 %v746_v1 }
 0x427   :  { %v852_v15 = vpop.f32.mrf.mxu1 }
 0x428   :  { %v853_v16 = vadd.f32 %v937_v14, %v852_v15 }
 0x429   :  { %v1003_v17 = vpop.f32.mrf.mxu1 }
 0x42a   :  { %860 = vst.msk [vmem:[%s1333_s11] sm:$0xff] %vm859_vm4, %v853_v16 }
 0x42b   :  { %v855_v18 = vpop.f32.mrf.mxu1 }
 0x42c   :  { %v856_v19 = vadd.f32 %v937_v14, %v855_v18 }
 0x42d   :  { %v1004_v20 = vpop.f32.mrf.mxu1 }
 0x42e   :  { %861 = vst.msk [vmem:[%s1333_s11 + $0x8] sm:$0xff] %vm859_vm4, %v856_v19 }
 0x42f   :  { %866 = vsyncpa [#allocation4], 1 }
 0x430   :  { %867 = vsyncpa [#allocation6], 1 }

</bundles_post_ra>
